<compile_context>
chip_gen: v7x
topology: tpu7x:2x2x1
jax: 0.10.0
libtpu: 0.0.40
codegen_flags: <defaults>
</compile_context>

<pallas_src>
import jax
import jax.numpy as jnp
from jax import lax
from jax.experimental import pallas as pl
from jax.experimental.pallas import tpu as pltpu


_ITEM_BYTES = 4                            # float32
_TARGET_BLOCK_BYTES = 6 * 1024 * 1024      # ~6 MiB per block (good on v6e/v7x)
_MIN_SPLIT_BYTES = 2 * 1024 * 1024         # force >=2 grid steps above this
_VMEM_LIMIT_BYTES = 48 * 1024 * 1024       # 2x(in)+2x(out) 6 MiB buffers << 48


def _make_kernel(seq_len, tl, n_lb):
    """Builds the per-block kernel (seq_len, tl, n_lb are compile-time ints)."""
    use_roll = (tl % 128 == 0) and tl >= 128     # roll path only on lane-aligned tiles
    need_mask = (seq_len % tl) != 0              # partial trailing L block exists

    def kernel(w_ref, lh_ref, rh_ref, x_ref, o_ref):
        # w_ref: (3,) f32 in SMEM.
        # lh_ref / rh_ref: (TN, n_lb) f32 halo columns (resident across j).
        # x_ref / o_ref: (TN, TL) f32 blocks in VMEM.
        j = pl.program_id(1)
        x = x_ref[...]
        tn = x.shape[0]
        w0 = w_ref[0]
        w1 = w_ref[1]
        w2 = w_ref[2]

        lane = lax.broadcasted_iota(jnp.int32, (tn, tl), 1)
        if need_mask:
            # Zero lanes past the true sequence end so the in-block shift of the
            # partial trailing block reproduces conv1d's zero padding exactly.
            x = jnp.where(j * tl + lane < seq_len, x, 0.0)

        # Select this L-block's halo columns (x[:, j*tl-1] and x[:, (j+1)*tl],
        # zeros at the sequence boundaries) from the small resident halo refs.
        col = lax.broadcasted_iota(jnp.int32, (tn, n_lb), 1)
        sel = col == j
        left_col = jnp.sum(jnp.where(sel, lh_ref[...], 0.0), axis=1, keepdims=True)
        right_col = jnp.sum(jnp.where(sel, rh_ref[...], 0.0), axis=1, keepdims=True)

        # PyTorch conv1d is cross-correlation (no filter flip), padding=1:
        #   y[n, l] = w0*x[n, l-1] + w1*x[n, l] + w2*x[n, l+1]
        if use_roll:
            # XLU rolls (separate issue slot from VALU / load-store); fix the
            # wrapped edge lane with the halo column.
            prev = jnp.where(lane == 0, left_col, pltpu.roll(x, 1, 1))
            nxt = jnp.where(lane == tl - 1, right_col, pltpu.roll(x, tl - 1, 1))
        elif tl == 1:
            prev, nxt = left_col, right_col
        else:
            # Small / non-128-aligned lane extents (only when tl == seq_len is
            # small): concat cost is negligible at these sizes.
            prev = jnp.concatenate([left_col, x[:, : tl - 1]], axis=1)
            nxt = jnp.concatenate([x[:, 1:], right_col], axis=1)

        o_ref[...] = w0 * prev + w1 * x + w2 * nxt

    return kernel


def _pick_tiles(n, seq_len):
    """Choose (batch_tile, seq_tile): ~6 MiB lane-dense blocks, (8,128)-legal."""
    tn_min = n if n < 8 else 8

    # Lane (sequence) tile: full L when it fits the block budget, else a large
    # multiple of 128 so long sequences still pipeline and fit VMEM.
    if seq_len * tn_min * _ITEM_BYTES <= _TARGET_BLOCK_BYTES:
        tl = seq_len
    else:
        tl = (_TARGET_BLOCK_BYTES // (tn_min * _ITEM_BYTES)) // 128 * 128
        tl = max(128, min(tl, (seq_len // 128) * 128))

    # Sublane (batch) tile.
    if n <= 8:
        tn = n
    else:
        cap = _TARGET_BLOCK_BYTES // (tl * _ITEM_BYTES)
        tn = n if cap >= n else max(8, (cap // 8) * 8)

    # Guarantee >=2 grid steps on non-trivial problems so the HBM<->VMEM
    # pipeline (and the second TensorCore on v7x) has something to overlap.
    total_bytes = n * seq_len * _ITEM_BYTES
    if total_bytes >= _MIN_SPLIT_BYTES and pl.cdiv(n, tn) * pl.cdiv(seq_len, tl) < 2:
        if n >= 16:
            tn = max(8, ((n // 2) // 8) * 8)
        elif seq_len >= 256 and tl == seq_len:
            tl = max(128, (((seq_len + 1) // 2 + 127) // 128) * 128)

    return tn, tl


def learnable_wavelet_transform(x, filters, *, block_rows=None, block_cols=None):
    """x: (N, 1, L) float32, filters: (1, 1, 3) float32 -> (N, 1, L) float32."""
    n, c, seq_len = x.shape
    assert c == 1, "module uses a single-channel 1x1x3 filter"
    x2d = x.reshape(n, seq_len).astype(jnp.float32)
    w = filters.reshape(3).astype(jnp.float32)

    tn, tl = _pick_tiles(n, seq_len)
    if block_rows is not None:
        tn = min(block_rows, n)
    if block_cols is not None:
        tl = min(block_cols, seq_len)
    n_nb = pl.cdiv(n, tn)
    n_lb = pl.cdiv(seq_len, tl)

    # Per-L-block halo columns (one lane per block): left[:, j] = x[:, j*tl-1],
    # right[:, j] = x[:, (j+1)*tl], zeros at the sequence boundaries.  Tiny
    # (N x n_lb) arrays -> negligible extra HBM traffic, resident in VMEM.
    starts = jnp.arange(n_lb, dtype=jnp.int32) * tl
    li = starts - 1
    ri = starts + tl
    left = jnp.where(li[None, :] >= 0,
                     jnp.take(x2d, jnp.clip(li, 0, seq_len - 1), axis=1), 0.0)
    right = jnp.where(ri[None, :] < seq_len,
                      jnp.take(x2d, jnp.clip(ri, 0, seq_len - 1), axis=1), 0.0)

    kernel = _make_kernel(seq_len, tl, n_lb)

    out2d = pl.pallas_call(
        kernel,
        out_shape=jax.ShapeDtypeStruct((n, seq_len), jnp.float32),
        grid_spec=pltpu.PrefetchScalarGridSpec(
            num_scalar_prefetch=0,
            grid=(n_nb, n_lb),
            in_specs=[
                pl.BlockSpec(memory_space=pltpu.MemorySpace.SMEM),   # 3 filter taps
                pl.BlockSpec((tn, n_lb), lambda i, j: (i, 0)),       # left halo cols
                pl.BlockSpec((tn, n_lb), lambda i, j: (i, 0)),       # right halo cols
                pl.BlockSpec((tn, tl), lambda i, j: (i, j)),         # input block
            ],
            out_specs=pl.BlockSpec((tn, tl), lambda i, j: (i, j)),
        ),
        compiler_params=pltpu.CompilerParams(
            # Both axes independent; lets v7x shard the grid across its 2 TCs.
            dimension_semantics=("parallel", "parallel"),
            vmem_limit_bytes=_VMEM_LIMIT_BYTES,
        ),
    )(w, left, right, x2d)

    return out2d.reshape(n, 1, seq_len)


def _reference(x, filters):
    # Plain-JAX reference: conv1d, stride=1, padding=1 (cross-correlation).
    return lax.conv_general_dilated(
        x, filters,
        window_strides=(1,),
        padding=[(1, 1)],
        dimension_numbers=("NCH", "OIH", "NCH"),
    )


if __name__ == "__main__":
    key = jax.random.PRNGKey(0)
    kx, kw, kx2, kx3 = jax.random.split(key, 4)

    # Deterministic stand-in for the module's torch.randn(1, 1, 3) parameter.
    filters = jax.random.normal(kw, (1, 1, 3), dtype=jnp.float32)

    # 1) Small shape consistent with the module: batch=2, channels=1, seq=16.
    x = jax.random.normal(kx, (2, 1, 16), dtype=jnp.float32)
    out = jax.block_until_ready(learnable_wavelet_transform(x, filters))
    ref = jax.block_until_ready(_reference(x, filters))
    assert out.shape == (2, 1, 16)
    assert jnp.allclose(out, ref, atol=1e-5, rtol=1e-5), "mismatch vs conv1d reference"

    # 2) Auto-tiled path: lane-aligned seq -> roll-based halo, full-N block.
    x2 = jax.random.normal(kx2, (20, 1, 256), dtype=jnp.float32)
    out2 = jax.block_until_ready(learnable_wavelet_transform(x2, filters))
    ref2 = jax.block_until_ready(_reference(x2, filters))
    assert jnp.allclose(out2, ref2, atol=1e-5, rtol=1e-5), "roll-path mismatch"

    # 3) Forced multi-block grid: roll halo across L blocks plus partial
    #    trailing blocks on both axes (exercises masking + halo columns).
    x3 = jax.random.normal(kx3, (20, 1, 640), dtype=jnp.float32)
    out3 = jax.block_until_ready(
        learnable_wavelet_transform(x3, filters, block_rows=8, block_cols=256))
    ref3 = jax.block_until_ready(_reference(x3, filters))
    assert jnp.allclose(out3, ref3, atol=1e-5, rtol=1e-5), "tiled-path mismatch"

    print("KERNEL_OK")
</pallas_src>

<mosaic_0001>
module attributes {stable_mosaic.version = 11 : i64} {
  func.func @kernel(%arg0: i32, %arg1: i32, %arg2: memref<3xf32, #tpu.memory_space<smem>>, %arg3: memref<2x1xf32, #tpu.memory_space<vmem>>, %arg4: memref<2x1xf32, #tpu.memory_space<vmem>>, %arg5: memref<2x16xf32, #tpu.memory_space<vmem>>, %arg6: memref<2x16xf32, #tpu.memory_space<vmem>>) attributes {dimension_semantics = [#tpu.dimension_semantics<parallel>, #tpu.dimension_semantics<parallel>], iteration_bounds = array<i64: 1, 1>, scalar_prefetch = 0 : i64, scratch_operands = 0 : i64, tpu.core_type = #tpu.core_type<tc>, window_params = [{transform_indices = @transform_0, window_bounds = array<i64: 3>}, {transform_indices = @transform_1, window_bounds = array<i64: 2, 1>}, {transform_indices = @transform_2, window_bounds = array<i64: 2, 1>}, {transform_indices = @transform_3, window_bounds = array<i64: 2, 16>}, {transform_indices = @transform_4, window_bounds = array<i64: 2, 16>}]} {
    %c0 = arith.constant 0 : index
    %c0_0 = arith.constant 0 : index
    %0 = vector.load %arg5[%c0, %c0_0] : memref<2x16xf32, #tpu.memory_space<vmem>>, vector<2x16xf32>
    %c0_1 = arith.constant 0 : index
    %1 = memref.load %arg2[%c0_1] : memref<3xf32, #tpu.memory_space<smem>>
    %c1 = arith.constant 1 : index
    %2 = memref.load %arg2[%c1] : memref<3xf32, #tpu.memory_space<smem>>
    %c2 = arith.constant 2 : index
    %3 = memref.load %arg2[%c2] : memref<3xf32, #tpu.memory_space<smem>>
    %4 = tpu.iota {dimensions = array<i32: 1>} : vector<2x1xi32>
    %5 = vector.broadcast %arg1 : i32 to vector<2x1xi32>
    %6 = arith.cmpi eq, %4, %5 : vector<2x1xi32>
    %c0_2 = arith.constant 0 : index
    %c0_3 = arith.constant 0 : index
    %7 = vector.load %arg3[%c0_2, %c0_3] : memref<2x1xf32, #tpu.memory_space<vmem>>, vector<2x1xf32>
    %cst = arith.constant 0.000000e+00 : f32
    %8 = vector.broadcast %cst : f32 to vector<2x1xf32>
    %9 = arith.select %6, %7, %8 : vector<2x1xi1>, vector<2x1xf32>
    %cst_4 = arith.constant dense<0.000000e+00> : vector<2xf32>
    %10 = vector.multi_reduction <add>, %9, %cst_4 [1] : vector<2x1xf32> to vector<2xf32>
    %11 = vector.shape_cast %10 : vector<2xf32> to vector<2x1xf32>
    %c0_5 = arith.constant 0 : index
    %c0_6 = arith.constant 0 : index
    %12 = vector.load %arg4[%c0_5, %c0_6] : memref<2x1xf32, #tpu.memory_space<vmem>>, vector<2x1xf32>
    %cst_7 = arith.constant 0.000000e+00 : f32
    %13 = vector.broadcast %cst_7 : f32 to vector<2x1xf32>
    %14 = arith.select %6, %12, %13 : vector<2x1xi1>, vector<2x1xf32>
    %cst_8 = arith.constant dense<0.000000e+00> : vector<2xf32>
    %15 = vector.multi_reduction <add>, %14, %cst_8 [1] : vector<2x1xf32> to vector<2xf32>
    %16 = vector.shape_cast %15 : vector<2xf32> to vector<2x1xf32>
    %17 = vector.extract_strided_slice %0 {offsets = [0, 0], sizes = [2, 15], strides = [1, 1]} : vector<2x16xf32> to vector<2x15xf32>
    %18 = tpu.concatenate %11, %17 in 1 : vector<2x1xf32>, vector<2x15xf32> -> vector<2x16xf32>
    %19 = vector.extract_strided_slice %0 {offsets = [0, 1], sizes = [2, 15], strides = [1, 1]} : vector<2x16xf32> to vector<2x15xf32>
    %20 = tpu.concatenate %19, %16 in 1 : vector<2x15xf32>, vector<2x1xf32> -> vector<2x16xf32>
    %21 = vector.broadcast %1 : f32 to vector<2x16xf32>
    %22 = arith.mulf %21, %18 : vector<2x16xf32>
    %23 = vector.broadcast %2 : f32 to vector<2x16xf32>
    %24 = arith.mulf %23, %0 : vector<2x16xf32>
    %25 = arith.addf %22, %24 : vector<2x16xf32>
    %26 = vector.broadcast %3 : f32 to vector<2x16xf32>
    %27 = arith.mulf %26, %20 : vector<2x16xf32>
    %28 = arith.addf %25, %27 : vector<2x16xf32>
    %c0_9 = arith.constant 0 : index
    %c0_10 = arith.constant 0 : index
    %29 = vector.load %arg6[%c0_9, %c0_10] : memref<2x16xf32, #tpu.memory_space<vmem>>, vector<2x16xf32>
    tpu.vector_store %arg6[%c0_9, %c0_10], %28 {strides = array<i32>} : memref<2x16xf32, #tpu.memory_space<vmem>>, vector<2x16xf32>,
    return
  }
  func.func @transform_0(%arg0: i32, %arg1: i32) -> i32 {
    %c0_i32 = arith.constant 0 : i32
    %c0_i32_0 = arith.constant 0 : i32
    return %c0_i32 : i32
  }
  func.func @transform_1(%arg0: i32, %arg1: i32) -> (i32, i32) {
    %c0_i32 = arith.constant 0 : i32
    %c0_i32_0 = arith.constant 0 : i32
    return %arg0, %c0_i32 : i32, i32
  }
  func.func @transform_2(%arg0: i32, %arg1: i32) -> (i32, i32) {
    %c0_i32 = arith.constant 0 : i32
    %c0_i32_0 = arith.constant 0 : i32
    return %arg0, %c0_i32 : i32, i32
  }
  func.func @transform_3(%arg0: i32, %arg1: i32) -> (i32, i32) {
    %c0_i32 = arith.constant 0 : i32
    return %arg0, %arg1 : i32, i32
  }
  func.func @transform_4(%arg0: i32, %arg1: i32) -> (i32, i32) {
    %c0_i32 = arith.constant 0 : i32
    return %arg0, %arg1 : i32, i32
  }
}

</mosaic_0001>

<bundles_post_ra>
// kernel: tpu_custom_call.1
= control target key start
LH: loop header
LB: loop body
LE: loop exit
PB: predicated region body
PF: predicated region fallthrough
CT: control target
= control target key end

     0   :  { %9 = vsyncpa [#allocation4], 0  ;;  %s184_s0 = inlined_call_operand.vmem [shape: f32[3], index: 0, kind: input, shape index: {}]   ;;  %s185_s1 = inlined_call_operand.vmem [shape: f32[2,1], index: 1, kind: input, shape index: {}]   ;;  %s186_s2 = inlined_call_operand.vmem [shape: f32[2,1], index: 2, kind: input, shape index: {}]   ;;  %s187_s3 = inlined_call_operand.vmem [shape: f32[2,16], index: 3, kind: input, shape index: {}]   ;;  %s188_s4 = inlined_call_operand.hbm [shape: f32[2,16], index: 4, kind: output, shape index: {}]  }
   0x1   :  { %10 = vsyncpa [#allocation3], 0  ;;  %s17_s17 = sshll.u32 %s184_s0, 4  ;;  %s18_s17 = int_to_ptr.vmem [resolvable:$true] %s17_s17 }
   0x2   :  { %s92_s18 = scalar_lea.vmem %s18_s17, 16  ;;  %p97_p1 = scmp.lt.s32.totalorder %s18_s17, %s18_s17 }
   0x3   :  { %p93_p0 = scmp.ne.s32.totalorder %s18_s17, %s92_s18  ;;  %p98_p2 = scmp.lt.s32.totalorder %s92_s18, %s92_s18 }
   0x5   :  { %p99_p3 = por %p98_p2, %p97_p1 }
   0x7   :  { %p100_p4 = pnand %p99_p3, %p93_p0 }
   0x9   :  { %103 = shalt.err (!%p100_p4)
}
   0xa   :  { %s130_s19 = smov [#allocation2]  }
   0xb   :  { %20 = dma.vmem_to_smem %s18_s17, 16, %s130_s19, [#allocation4]  }
   0xc   :  { %126 = dma.done.wait [#allocation4], 16  }
   0xd   :  { %127 = vsyncadd [#allocation4], 4294967280 }
   0xe   :  { %30 = sfence }
   0xf   :  { %v31_v0 = vld [vmem:[%s187_s3] sm:$0x3]  ;;  %v35_v1 = vlaneseq  ;;  %s131_s22 = smov 1   ;;  %s132_s24 = smov 127   ;;  %vm49_vm1 = vcmask 7168   ;;  %vm58_vm2 = vcmask 121856  }
  0x10   :  { %46 = vrot.lane.b32.xlu0 %v31_v0, %s131_s22  ;;  %v42_v3 = vld [vmem:[%s186_s2] sm:$0x3]  ;;  %s133_s25 = smov 15   ;;  %s85_s26 = sld [smem:[#allocation2 + $0x1]]  ;;  %vm68_vm3 = vcmask 123904  }
  0x11   :  { %v36_v2 = vand.u32 127, %v35_v1  ;;  %s32_s27 = sld [smem:[#allocation2]]  ;;  %v39_v5 = vld [vmem:[%s185_s1] sm:$0x3]  ;;  %s86_s3 = sld [smem:[#allocation2 + $0x2]] }
  0x12   :  { %s134_s2 = smov [#allocation5]  }
  0x13   :  { %vm38_vm0 = vcmp.eq.s32.totalorder %v36_v2, 0  ;;  %s76_s30 = sshll.u32 %s134_s2, 4  ;;  %s77_s30 = int_to_ptr.vmem [resolvable:$true] %s76_s30 }
  0x14   :  { %v43_v4 = vsel %vm38_vm0, %v42_v3, 0.0  ;;  %51 = vrot.lane.b32.xlu0 %v31_v0, %s132_s24  ;;  %v40_v7 = vsel %vm38_vm0, %v39_v5, 0.0  ;;  %s104_s1 = scalar_lea.vmem %s77_s30, 32  ;;  %p109_p6 = scmp.lt.s32.totalorder %s77_s30, %s77_s30 }
  0x15   :  { %55 = vrot.lane.b32.xlu1 %v43_v4, %s133_s25  ;;  %p105_p5 = scmp.ne.s32.totalorder %s77_s30, %s104_s1  ;;  %p110_p7 = scmp.lt.s32.totalorder %s104_s1, %s104_s1 }
  0x16   :  { %v62_v6 = vstv %s85_s26 }
  0x17   :  { %v60_v8 = vstv %s32_s27  ;;  %v63_v9 = vmul.f32 %v62_v6, %v31_v0  ;;  %v65_v13 = vstv %s86_s3  ;;  %p111_p8 = por %p110_p7, %p109_p6 }
  0x19   :  { %p112_p9 = pnand %p111_p8, %p105_p5 }
  0x82   :  { %v47_v10 = vpop.permute.xlu0 %46 }
  0x83   :  { %v50_v11 = vsel %vm49_vm1, %v40_v7, %v47_v10 }
  0x84   :  { %v61_v12 = vmul.f32 %v60_v8, %v50_v11 }
  0x86   :  { %v52_v14 = vpop.permute.xlu0 %51  ;;  %v64_v15 = vadd.f32 %v63_v9, %v61_v12 }
  0x87   :  { %v56_v16 = vpop.permute.xlu1 %55 }
  0x88   :  { %v59_v17 = vsel %vm58_vm2, %v52_v14, %v56_v16 }
  0x89   :  { %v66_v18 = vmul.f32 %v65_v13, %v59_v17 }
  0x8b   :  { %v67_v19 = vadd.f32 %v66_v18, %v64_v15 }
  0x8d   :  { %69 = vst.msk [vmem:[#allocation5] sm:$0x3] %vm68_vm3, %v67_v19 }
  0x8e   :  { %115 = shalt.err (!%p112_p9)
}
  0x8f   :  { %s116_s7 = scalar_lea.hbm %s188_s4, 32 }
  0x90   :  { %p117_p10 = scmp.ne.s32.totalorder %s188_s4, %s116_s7  ;;  %p120_p11 = scmp.lt.u32.totalorder %s116_s7, %s188_s4 }
  0x92   :  { %p122_p12 = pnand %p120_p11, %p117_p10 }
  0x94   :  { %125 = shalt.err (!%p122_p12)
}
  0x95   :  { %79 = dma.vmem_to_hbm [thread:$0]  %s77_s30, 32, %s188_s4, [#allocation3]  }
  0x96   :  { %128 = dma.done.wait [#allocation3], 32  }
  0x97   :  { %129 = vsyncadd [#allocation3], 4294967264 }
  0x98   :  { %83 = vsyncpa [#allocation3], 1 }
  0x99   :  { %84 = vsyncpa [#allocation4], 1 }

</bundles_post_ra>
